<compile_context>
chip_gen: v7x
topology: tpu7x:2x2x1
jax: 0.10.0
libtpu: 0.0.40
codegen_flags: <defaults>
</compile_context>

<pallas_src>
import functools

import jax
import jax.numpy as jnp
from jax.experimental import pallas as pl
from jax.experimental.pallas import tpu as pltpu

C_PAD = 128          # lane-dense class width (real num_classes padded up to one lane width)
DEFAULT_TB = 1024    # batch tile: big enough to amortize per-grid-step overhead on v5e/v6e/v7x
SMALL_BATCH = 128    # below this, fall back to a plain fused dot (kernel overhead dominates)


def _round_up(x, m):
    return ((x + m - 1) // m) * m


def _linear_kernel(x_ref, w_ref, b_ref, o_ref):
    # x_ref: [TB, F] f32/bf16   w_ref: [F, C_PAD] bf16   b_ref: [1, C_PAD] f32
    # o_ref: [TB, C_PAD] f32
    x_bf16 = x_ref[...].astype(jnp.bfloat16)       # in-kernel cast (no extra HBM pass)
    acc = jnp.dot(x_bf16, w_ref[...], preferred_element_type=jnp.float32)
    o_ref[...] = acc + b_ref[...]                  # f32 epilogue; bias broadcast over rows


def prepare_linear_params(weight, bias):
    """One-time (init) prep of the frozen classifier params.

    weight: [C, F] f32 (PyTorch nn.Linear layout)  ->  [F, C_PAD] bf16 (pre-transposed, lane-padded)
    bias:   [C]    f32                             ->  [1, C_PAD] f32
    Padded columns get weight 0 / bias 0; they are sliced away in the wrapper and
    must never be consumed directly (e.g. by a softmax over 128).
    """
    C, F = weight.shape
    c_pad = _round_up(max(C, 1), C_PAD)
    w_t = jnp.zeros((F, c_pad), dtype=jnp.bfloat16)
    w_t = w_t.at[:, :C].set(weight.T.astype(jnp.bfloat16))
    b2d = jnp.zeros((1, c_pad), dtype=jnp.float32)
    b2d = b2d.at[:, :C].set(bias.astype(jnp.float32).reshape(1, C))
    return w_t, b2d


@functools.partial(jax.jit, static_argnames=("num_classes", "tb"))
def linear_classifier_forward(x, w_pad, b_pad, *, num_classes, tb=DEFAULT_TB):
    """Forward pass of LinearClassifier (backbone == identity, see TODO above).

    Args:
      x:      [B, F] features (f32 or bf16) — backbone output.
      w_pad:  [F, C_PAD] bf16 pre-transposed, lane-padded weight (prepare_linear_params).
      b_pad:  [1, C_PAD] f32 lane-padded bias.
    Returns:
      [B, num_classes] float32 logits.
    """
    B, F = x.shape
    _, c_pad = w_pad.shape

    # Tiny batches: pallas_call fixed overhead dominates; identical numerics
    # (bf16 operands, f32 accumulation) via XLA's fused dot.
    if B < SMALL_BATCH:
        out = jnp.dot(x.astype(jnp.bfloat16), w_pad,
                      preferred_element_type=jnp.float32) + b_pad
        return out[:, :num_classes]

    # Batch tile: sublane-packing friendly (multiple of 16), capped by `tb`.
    tb_eff = min(tb, _round_up(B, 16))

    out = pl.pallas_call(
        _linear_kernel,
        out_shape=jax.ShapeDtypeStruct((B, c_pad), jnp.float32),
        grid=(pl.cdiv(B, tb_eff),),                 # partial last block masked by Pallas
        in_specs=[
            pl.BlockSpec((tb_eff, F), lambda i: (i, 0)),     # features: streamed per batch tile
            pl.BlockSpec((F, c_pad), lambda i: (0, 0)),      # weight: resident (constant index_map)
            pl.BlockSpec((1, c_pad), lambda i: (0, 0)),      # bias: resident
        ],
        out_specs=pl.BlockSpec((tb_eff, c_pad), lambda i: (i, 0)),
        compiler_params=pltpu.CompilerParams(
            # Independent batch tiles. On v7x, use pltpu.CORE_PARALLEL here for
            # explicit 2-TensorCore sharding of the batch axis.
            dimension_semantics=("parallel",),
        ),
        cost_estimate=pl.CostEstimate(
            flops=2 * B * F * c_pad,
            transcendentals=0,
            bytes_accessed=B * F * x.dtype.itemsize + F * c_pad * 2 + B * c_pad * 4,
        ),
    )(x, w_pad, b_pad)

    return out[:, :num_classes]


if __name__ == "__main__":
    # Module defaults: num_features=768, num_classes=2.
    num_features = 768
    num_classes = 2

    key = jax.random.PRNGKey(0)
    k_x, k_w, k_x2 = jax.random.split(key, 3)

    # Deterministic parameter init matching the module's __init__:
    #   weight ~ N(0, 0.01), bias = 0
    weight = 0.01 * jax.random.normal(
        k_w, (num_classes, num_features), dtype=jnp.float32)
    bias = jnp.zeros((num_classes,), dtype=jnp.float32)

    # Init-time prep of frozen params (transpose + lane-pad + bf16 cast), done once.
    w_pad, b_pad = prepare_linear_params(weight, bias)

    # --- Pallas path: small-but-non-trivial batch, non-multiple of the tile so the
    #     cdiv grid + masked partial last block are exercised (tb=128 -> 2 grid steps).
    batch = 200
    x = jax.random.normal(k_x, (batch, num_features), dtype=jnp.float32)
    out = linear_classifier_forward(x, w_pad, b_pad, num_classes=num_classes, tb=128)
    out = jax.block_until_ready(out)

    # Reference with matching mixed precision (bf16 operands, f32 accumulation).
    ref_bf16 = jnp.dot(x.astype(jnp.bfloat16), weight.T.astype(jnp.bfloat16),
                       preferred_element_type=jnp.float32) + bias
    # Full-f32 reference (loose tolerance — expected bf16 operand rounding).
    ref_f32 = x @ weight.T + bias

    assert out.shape == (batch, num_classes)
    assert jnp.allclose(out, ref_bf16, atol=1e-4, rtol=1e-4)
    assert jnp.allclose(out, ref_f32, atol=2e-2, rtol=2e-2)

    # --- Tiny-batch fallback path (B < SMALL_BATCH), same semantics.
    x_small = jax.random.normal(k_x2, (8, num_features), dtype=jnp.float32)
    out_small = jax.block_until_ready(
        linear_classifier_forward(x_small, w_pad, b_pad, num_classes=num_classes))
    ref_small = x_small @ weight.T + bias
    assert out_small.shape == (8, num_classes)
    assert jnp.allclose(out_small, ref_small, atol=2e-2, rtol=2e-2)

    print("KERNEL_OK")
</pallas_src>

<mosaic_0001>
module attributes {stable_mosaic.version = 11 : i64} {
  func.func @_linear_kernel(%arg0: i32, %arg1: memref<128x768xf32, #tpu.memory_space<vmem>>, %arg2: memref<768x128xbf16, #tpu.memory_space<vmem>>, %arg3: memref<1x128xf32, #tpu.memory_space<vmem>>, %arg4: memref<128x128xf32, #tpu.memory_space<vmem>>) attributes {dimension_semantics = [#tpu.dimension_semantics<parallel>], iteration_bounds = array<i64: 2>, scalar_prefetch = 0 : i64, scratch_operands = 0 : i64, tpu.core_type = #tpu.core_type<tc>, window_params = [{transform_indices = @transform_0, window_bounds = array<i64: 128, 768>}, {pipeline_mode = #tpu.pipeline_mode<synchronous>, transform_indices = @transform_1, window_bounds = array<i64: 768, 128>}, {pipeline_mode = #tpu.pipeline_mode<synchronous>, transform_indices = @transform_2, window_bounds = array<i64: 1, 128>}, {transform_indices = @transform_3, window_bounds = array<i64: 128, 128>}]} {
    %c0 = arith.constant 0 : index
    %c0_0 = arith.constant 0 : index
    %0 = vector.load %arg1[%c0, %c0_0] : memref<128x768xf32, #tpu.memory_space<vmem>>, vector<128x768xf32>
    %1 = arith.truncf %0 : vector<128x768xf32> to vector<128x768xbf16>
    %c0_1 = arith.constant 0 : index
    %c0_2 = arith.constant 0 : index
    %2 = vector.load %arg2[%c0_1, %c0_2] : memref<768x128xbf16, #tpu.memory_space<vmem>>, vector<768x128xbf16>
    %cst = arith.constant dense<0.000000e+00> : vector<128x128xf32>
    %3 = tpu.matmul %1, %2, %cst {dimension_numbers = #tpu.dot_dimension_numbers<[1], [0], [0], [1], [0, 0, 1, 1], [], []>} : vector<128x768xbf16>, vector<768x128xbf16>, vector<128x128xf32> -> vector<128x128xf32>
    %c0_3 = arith.constant 0 : index
    %c0_4 = arith.constant 0 : index
    %4 = vector.load %arg3[%c0_3, %c0_4] : memref<1x128xf32, #tpu.memory_space<vmem>>, vector<1x128xf32>
    %5 = vector.broadcast %4 : vector<1x128xf32> to vector<128x128xf32>
    %6 = arith.addf %3, %5 : vector<128x128xf32>
    %c0_5 = arith.constant 0 : index
    %c0_6 = arith.constant 0 : index
    %7 = vector.load %arg4[%c0_5, %c0_6] : memref<128x128xf32, #tpu.memory_space<vmem>>, vector<128x128xf32>
    tpu.vector_store %arg4[%c0_5, %c0_6], %6 {strides = array<i32>} : memref<128x128xf32, #tpu.memory_space<vmem>>, vector<128x128xf32>,
    return
  }
  func.func @transform_0(%arg0: i32) -> (i32, i32) {
    %c0_i32 = arith.constant 0 : i32
    %c0_i32_0 = arith.constant 0 : i32
    return %arg0, %c0_i32 : i32, i32
  }
  func.func @transform_1(%arg0: i32) -> (i32, i32) {
    %c0_i32 = arith.constant 0 : i32
    %c0_i32_0 = arith.constant 0 : i32
    %c0_i32_1 = arith.constant 0 : i32
    return %c0_i32, %c0_i32_0 : i32, i32
  }
  func.func @transform_2(%arg0: i32) -> (i32, i32) {
    %c0_i32 = arith.constant 0 : i32
    %c0_i32_0 = arith.constant 0 : i32
    %c0_i32_1 = arith.constant 0 : i32
    return %c0_i32, %c0_i32_0 : i32, i32
  }
  func.func @transform_3(%arg0: i32) -> (i32, i32) {
    %c0_i32 = arith.constant 0 : i32
    %c0_i32_0 = arith.constant 0 : i32
    return %arg0, %c0_i32 : i32, i32
  }
}

</mosaic_0001>

<bundles_post_ra>
// kernel: linear_classifier_forward.1
= control target key start
LH: loop header
LB: loop body
LE: loop exit
PB: predicated region body
PF: predicated region fallthrough
CT: control target
= control target key end

     0   :  { %8 = vsyncpa [#allocation3], 0  ;;  %s2415_s0 = inlined_call_operand.hbm [shape: f32[200,768], index: 0, kind: input, shape index: {}]   ;;  %s2416_s1 = inlined_call_operand.hbm [shape: bf16[768,128], index: 1, kind: input, shape index: {}]   ;;  %s2417_s2 = inlined_call_operand.vmem [shape: f32[1,128], index: 2, kind: input, shape index: {}]   ;;  %s2418_s3 = inlined_call_operand.vmem [shape: f32[200,128], index: 3, kind: output, shape index: {}]  }
   0x1   :  { %10 = vsyncpa [#allocation3 + $0x1], 0 }
   0x2   :  { %11 = vsyncpa [#allocation5], 0  ;;  %s1998_s12 = smov 0   ;;  %s2000_s13 = smov 0  }
   0x3   :  { %s2002_s14 = smov 0   ;;  %s2004_s15 = smov 0  }
   0x4 LB: > { %s2017_s16 = sadd.s32 4294967295, %s1938_s15   ;;  %s2020_s17 = sadd.s32 1, %s1938_s15   ;;  %s1938_s15 = sphi %s2004_s15, %s2439_s15   ;;  %s1934_s14 = sphi %s2002_s14, %s2438_s14   ;;  %s1930_s13 = sphi %s2000_s13, %s2437_s13   ;;  %s1926_s12 = sphi %s1998_s12, %s2436_s12  }
   0x5   : > { %s21_s18 = ssub.s32 %s1938_s15, %s2020_s17  ;;  %s24_s19 = sadd.s32 1, %s1934_s14 }
   0x6   : > { %p22_p0 = scmp.eq.s32.totalorder %s21_s18, 0  ;;  %p31_p1 = scmp.ne.s32.totalorder %s1934_s14, %s1930_s13 }
   0x7   : > { %p32_p2 = scmp.eq.s32.totalorder %s1938_s15, 0  ;;  %p37_p3 = scmp.ne.s32.totalorder %s1930_s13, %s1926_s12 }
   0x8   : > { %s2030_s20 = scalar_select %p22_p0, %s1934_s14, %s24_s19  }
   0x9   : > { %p2032_p4 = por %p32_p2, %p31_p1  ;;  %p2419_p5 = scmp.eq.s32.totalorder %s2017_s16, 0 }
   0xa   : > { %p103_p6 = scmp.eq.s32.totalorder %s2017_s16, 1  ;;  %p1359_p7 = scmp.ge.s32.totalorder %s1938_s15, 1 }
   0xb   : > { %s2422_s21 = scalar_select %p2032_p4, 1, 0 }
   0xc   : > { %p2041_p8 = por %p2419_p5, %p37_p3  ;;  %p116_p9 = scmp.lt.s32.totalorder %s1938_s15, 3 }
   0xd   : > { %p2046_p10 = por %p103_p6, %p31_p1  ;;  %s1972_s25 = smov [#allocation4]  }
   0xe   : > { %s2423_s22 = scalar_select %p2041_p8, 1, 0 }
   0xf   : > { %s2424_s23 = scalar_select %p2046_p10, 1, 0 }
  0x10   : > { %p2050_p11 = pnand %p1359_p7, %p116_p9  ;;  %s128_s26 = sshll.u32 %s1972_s25, 4  ;;  %s129_s26 = int_to_ptr.vmem [resolvable:$true] %s128_s26 }
  0x11   : > { %s1812_s30 = scalar_lea.hbm %s2416_s1, 6144 }
  0x12   : > { %s2425_s24 = scalar_select %p2050_p11, 1, 0 }
  0x13   : > { %p1657_p12 = pneg %p2050_p11  ;;  %p1813_p0 = scmp.ne.s32.totalorder %s2416_s1, %s1812_s30 }
  0x14   : > { %p1819_p6 = scmp.lt.u32.totalorder %s1812_s30, %s2416_s1 }
  0x15   : > { %p2058_p13 = pnand %p1657_p12, %p2419_p5 }
  0x17   : > { %p1814_p1 = pneg %p2058_p13 }
  0x19   : > { %p1815_p2 = pnand %p1814_p1, %p1813_p0 }
  0x1b   : > { %p1816_p3 = pneg %p1815_p2 }
  0x1d   : > { %p1821_p7 = pnand %p1819_p6, %p1816_p3 }
  0x1f   : > { %1824 = shalt.err (!%p1821_p7)
}
  0x20   : > { %s1825_s8 = scalar_lea.vmem %s129_s26, 6144  ;;  %p1833_p10 = scmp.lt.s32.totalorder %s129_s26, %s129_s26 }
  0x21   : > { %p1826_p9 = scmp.ne.s32.totalorder %s129_s26, %s1825_s8  ;;  %p1834_p8 = scmp.lt.s32.totalorder %s1825_s8, %s1825_s8 }
  0x23   : > { %p1828_p12 = pnand %p1826_p9, %p1814_p1  ;;  %p1835_p11 = por %p1834_p8, %p1833_p10 }
  0x25   : > { %p1829_p5 = pneg %p1828_p12 }
  0x27   : > { %p1836_p4 = pnand %p1835_p11, %p1829_p5 }
  0x29   : > { %1839 = shalt.err (!%p1836_p4)
}
  0x2a   : > { %s1973_s9 = smov 64   ;;  %s1974_s10 = smov 4  }
  0x2b   : > { %1660 = dma.hbm_to_vmem [thread:$0]  (!%p2058_p13), %s2416_s1, 6144, %s129_s26, [#allocation5], %s1973_s9, %s1973_s9, %s1974_s10  }
  0x2c   : > { %p1361_p0 = scmp.ge.s32.totalorder %s1938_s15, 2 }
  0x2d   : > { %p2427_p2 = scmp.ne.s32.totalorder (!%p1361_p0), %s2422_s21, 0 }
  0x2e   : > { %141 = sbr.rel (%p1361_p0) target bundleno = 89 (0x59), region = 24 }
  0x35   : > { %144 = sbr.rel (!%p2427_p2) target bundleno = 89 (0x59), region = 28  ;;  %s145_s18 = sand.u32 (%p2427_p2), 1, %s1934_s14  }
  0x36   : > { %s1362_s19 = sshll.u32 (%p2427_p2), %s1938_s15, 4  ;;  %s1649_s25 = smul.u32 (%p2427_p2), 768, %s145_s18 }
  0x37   : > { %s151_s28 = ssub.s32 (%p2427_p2), 25, %s1362_s19  ;;  %s2086_s30 = scalar_lea.sflag (%p2427_p2), [#allocation3], %s145_s18 }
  0x38   : > { %p152_p4 = scmp.lt.s32.totalorder (%p2427_p2), %s151_s28, 16  ;;  %s149_s26 = scalar_lea.vmem (%p2427_p2), [#allocation2], %s1649_s25 }
  0x3c   : > { %s2441_s28 = smov (!%p152_p4, %s151_s28), 16 }
  0x3d   : > { %s2083_s29 = smul.u32 768, %s2441_s28 }
  0x3f   : > { %s157_s27 = ssub.s32 12288, %s2083_s29 }
  0x40   : > { %158 = vsyncadd %s2086_s30, %s157_s27  ;;  %p1365_p5 = scmp.ne.s32.totalorder %s2083_s29, 0  ;;  %s1650_s21 = smul.u32 12288, %s1938_s15 }
  0x41   : > { %s164_s4 = sshll.u32 %s149_s26, 4  ;;  %s1844_s15 = scalar_lea.hbm %s2415_s0, 19200  ;;  %s2096_s4 = int_to_ptr.vmem [resolvable:$true] %s164_s4 }
  0x42   : > { %s2094_s7 = scalar_lea.hbm %s2415_s0, %s1650_s21 }
  0x43   : > { %s1840_s8 = scalar_lea.hbm %s2094_s7, %s2083_s29  ;;  %p1845_p13 = scmp.lt.u32.totalorder %s2094_s7, %s2415_s0 }
  0x44   : > { %p1841_p8 = scmp.ne.s32.totalorder %s2094_s7, %s1840_s8  ;;  %p1846_p1 = scmp.lt.u32.totalorder %s1844_s15, %s1840_s8 }
  0x45   : > { %p1848_p6 = scmp.lt.u32.totalorder %s1840_s8, %s2094_s7 }
  0x46   : > { %p1842_p10 = pnand %p1841_p8, %p1365_p5  ;;  %p1847_p3 = por %p1846_p1, %p1845_p13 }
  0x48   : > { %p1843_p11 = pneg %p1842_p10  ;;  %p1849_p7 = por %p1848_p6, %p1847_p3 }
  0x4a   : > { %p1850_p9 = pnand %p1849_p7, %p1843_p11 }
  0x4c   : > { %1853 = shalt.err (!%p1850_p9)
}
  0x4d   : > { %s1854_s18 = scalar_lea.vmem %s2096_s4, %s2083_s29  ;;  %s1975_s19 = smov [#allocation2]  }
  0x4e   : > { %p1855_p12 = scmp.ne.s32.totalorder %s2096_s4, %s1854_s18  ;;  %s1858_s25 = sshll.u32 %s1975_s19, 4  ;;  %s1859_s25 = int_to_ptr.vmem [resolvable:$false] %s1858_s25 }
  0x4f   : > { %s1860_s28 = scalar_lea.vmem %s1859_s25, 24576  ;;  %p1861_p4 = scmp.lt.s32.totalorder %s2096_s4, %s1859_s25 }
  0x50   : > { %p1856_p0 = pnand %p1855_p12, %p1365_p5  ;;  %p1862_p8 = scmp.lt.s32.totalorder %s1860_s28, %s1854_s18 }
  0x52   : > { %p1857_p2 = pneg %p1856_p0  ;;  %p1863_p10 = por %p1862_p8, %p1861_p4 }
  0x54   : > { %p1864_p13 = pnand %p1863_p10, %p1857_p2 }
  0x56   : > { %1867 = shalt.err (!%p1864_p13)
}
  0x57   : > { %s1976_s27 = smov 768   ;;  %s1977_s26 = smov 48  }
  0x58   : > { %170 = dma.hbm_to_vmem [thread:$0]  (%p1365_p5), %s2094_s7, %s2083_s29, %s2096_s4, %s2086_s30, %s1976_s27, %s1976_s27, %s1977_s26  }
  0x59 PF: > { %p2428_p11 = scmp.ne.s32.totalorder %s2425_s24, 0 }
  0x5a   : > { %s2126_s21 = sand.u32 (!%p2428_p11), 1, %s1930_s13   ;;  %p2429_p1 = scmp.ne.s32.totalorder (!%p2428_p11), %s2423_s22, 0 }
  0x5b   : > { %176 = sbr.rel (%p2428_p11) target bundleno = 494 (0x1ee), region = 32  ;;  %s179_s6 = scalar_lea.sflag (!%p2428_p11), [#allocation3], %s2126_s21 }
  0x5c   : > { %s1651_s5 = smul.u32 (!%p2428_p11), 768, %s2126_s21 }
  0x5e   : > { %s2130_s8 = scalar_lea.vmem (!%p2428_p11), [#allocation2], %s1651_s5 }
  0x62   : > { %1917 = dma.done.wait (%p2429_p1), %s179_s6, 12288  }
  0x63   : > { %1919 = vsyncadd (%p2429_p1), %s179_s6, 4294955008  ;;  %p2430_p5 = scmp.eq.s32.totalorder %s2017_s16, 0 }
  0x65   : > { %1921 = dma.done.wait (%p2430_p5), [#allocation5], 6144   ;;  %p2431_p3 = pmov %p2430_p5 }
  0x66   : > { %v1764_v0 = vld [vmem:[#allocation4 + $0x40] sm:$0xff]   ;;  %v1766_v2 = vld [vmem:[#allocation4 + $0x48] sm:$0xff]   ;;  %v1768_v4 = vld [vmem:[#allocation4 + $0x50] sm:$0xff]   ;;  %s1371_s29 = sshll.u32 %s2126_s21, 7  ;;  %p2432_p6 = scmp.ne.s32.totalorder %s2424_s23, 0 }
  0x67   : > { %1923 = vsyncadd (%p2431_p3), [#allocation5], 4294961152  ;;  %v1765_v1 = vld [vmem:[#allocation4] sm:$0xff]   ;;  %1441 = vmatprep.subr.bf16.mxu0 %v1764_v0  ;;  %1633 = vmatprep.subr.bf16.mxu1 %v1764_v0  ;;  %v1767_v3 = vld [vmem:[#allocation4 + $0x8] sm:$0xff]   ;;  %s2268_s30 = scalar_lea.vmem [#allocation6], %s1371_s29   ;;  %s1422_s4 = sshll.u32 (%p2432_p6), %s2017_s16, 4 }
  0x68   : > { %1442 = vmatpush3.bf16.msra.mxu0 %v1765_v1  ;;  %1641 = vmatpush3.bf16.msra.mxu1 %v1765_v1  ;;  %v1769_v5 = vld [vmem:[#allocation4 + $0x10] sm:$0xff]   ;;  %v1770_v6 = vld [vmem:[#allocation4 + $0x58] sm:$0xff]   ;;  %v1772_v8 = vld [vmem:[#allocation4 + $0x60] sm:$0xff]   ;;  %s1438_s7 = sshll.u32 (%p2432_p6), %s2017_s16, 7  ;;  %s1070_s9 = ssub.s32 (%p2432_p6), 25, %s1422_s4 }
  0x69   : > { %1443 = vmatprep.subr.bf16.mxu0 %v1766_v2  ;;  %1634 = vmatprep.subr.bf16.mxu1 %v1766_v2  ;;  %v1771_v7 = vld [vmem:[#allocation4 + $0x18] sm:$0xff]   ;;  %v1773_v9 = vld [vmem:[#allocation4 + $0x20] sm:$0xff]   ;;  %v1774_v10 = vld [vmem:[#allocation4 + $0x68] sm:$0xff]   ;;  %s2319_s11 = scalar_lea.vmem (%p2432_p6), %s2418_s3, %s1438_s7   ;;  %p1071_p7 = scmp.lt.s32.totalorder (%p2432_p6), %s1070_s9, 16 }
  0x6a   : > { %v221_v11 = vld [vmem:[%s2130_s8 + $0x8] sm:$0xff]  ;;  %v227_v12 = vld [vmem:[%s2130_s8 + $0x38] sm:$0xff]  ;;  %v1776_v18 = vld [vmem:[#allocation4 + $0x70] sm:$0xff]  }
  0x6b   : > { %v269_v13 = vld [vmem:[%s2130_s8 + $0x188] sm:$0xff]  ;;  %v317_v14 = vpack.c.bf16 %v227_v12, %v221_v11  ;;  %v275_v15 = vld [vmem:[%s2130_s8 + $0x1b8] sm:$0xff]  ;;  %v1777_v19 = vld [vmem:[#allocation4 + $0x30] sm:$0xff]  }
  0x6c   : > { %1444 = vmatpush3.bf16.msra.mxu0 %v1767_v3  ;;  %1642 = vmatpush3.bf16.msra.mxu1 %v1767_v3  ;;  %v341_v16 = vpack.c.bf16 %v275_v15, %v269_v13  ;;  %v1775_v17 = vld [vmem:[#allocation4 + $0x28] sm:$0xff]   ;;  %v1778_v20 = vld [vmem:[#allocation4 + $0x78] sm:$0xff]   ;;  %v220_v22 = vld [vmem:[%s2130_s8] sm:$0xff] }
  0x6d   : > { %1445 = vmatprep.subr.bf16.mxu0 %v1768_v4  ;;  %1635 = vmatprep.subr.bf16.mxu1 %v1768_v4  ;;  %v1779_v21 = vld [vmem:[#allocation4 + $0x38] sm:$0xff]   ;;  %v226_v23 = vld [vmem:[%s2130_s8 + $0x30] sm:$0xff]  ;;  %v268_v24 = vld [vmem:[%s2130_s8 + $0x180] sm:$0xff] }
  0x6e   : > { %787 = vmatprep.mubr.bf16.mxu0 %v317_v14  ;;  %819 = vmatprep.mubr.bf16.mxu1 %v341_v16  ;;  %v274_v25 = vld [vmem:[%s2130_s8 + $0x1b0] sm:$0xff]  ;;  %v1780_v26 = vld [vmem:[#allocation4 + $0xc0] sm:$0xff]   ;;  %v233_v28 = vld [vmem:[%s2130_s8 + $0x68] sm:$0xff]  ;;  %v316_v33 = vpack.c.bf16 %v226_v23, %v220_v22 }
  0x6f   : > { %v1781_v27 = vld [vmem:[#allocation4 + $0x140] sm:$0xff]   ;;  %v239_v29 = vld [vmem:[%s2130_s8 + $0x98] sm:$0xff]  ;;  %v281_v32 = vld [vmem:[%s2130_s8 + $0x1e8] sm:$0xff]  ;;  %v340_v34 = vpack.c.bf16 %v274_v25, %v268_v24 }
  0x70   : > { %1446 = vmatpush3.bf16.msra.mxu0 %v1769_v5  ;;  %1643 = vmatpush3.bf16.msra.mxu1 %v1769_v5  ;;  %v1782_v30 = vld [vmem:[#allocation4 + $0x80] sm:$0xff]   ;;  %v287_v35 = vld [vmem:[%s2130_s8 + $0x218] sm:$0xff]  ;;  %v1784_v36 = vld [vmem:[#allocation4 + $0xc8] sm:$0xff]   ;;  %v323_v40 = vpack.c.bf16 %v239_v29, %v233_v28 }
  0x71   : > { %1447 = vmatprep.subr.bf16.mxu0 %v1770_v6  ;;  %1636 = vmatprep.subr.bf16.mxu1 %v1770_v6  ;;  %v1783_v31 = vld [vmem:[#allocation4 + $0x100] sm:$0xff]   ;;  %v1785_v37 = vld [vmem:[#allocation4 + $0x148] sm:$0xff]   ;;  %v347_v41 = vpack.c.bf16 %v287_v35, %v281_v32  ;;  %v238_v43 = vld [vmem:[%s2130_s8 + $0x90] sm:$0xff] }
  0x72   : > { %v1786_v38 = vld [vmem:[#allocation4 + $0x88] sm:$0xff]   ;;  %v232_v42 = vld [vmem:[%s2130_s8 + $0x60] sm:$0xff]  ;;  %v286_v45 = vld [vmem:[%s2130_s8 + $0x210] sm:$0xff] }
  0x73   : > { %v1787_v39 = vld [vmem:[#allocation4 + $0x108] sm:$0xff]   ;;  %v280_v44 = vld [vmem:[%s2130_s8 + $0x1e0] sm:$0xff]  ;;  %v1788_v46 = vld [vmem:[#allocation4 + $0xd0] sm:$0xff]   ;;  %v322_v49 = vpack.c.bf16 %v238_v43, %v232_v42 }
  0x74   : > { %1448 = vmatpush3.bf16.msra.mxu0 %v1771_v7  ;;  %1644 = vmatpush3.bf16.msra.mxu1 %v1771_v7  ;;  %v1789_v47 = vld [vmem:[#allocation4 + $0x150] sm:$0xff]   ;;  %v245_v48 = vld [vmem:[%s2130_s8 + $0xc8] sm:$0xff]  ;;  %v346_v50 = vpack.c.bf16 %v286_v45, %v280_v44  ;;  %v251_v51 = vld [vmem:[%s2130_s8 + $0xf8] sm:$0xff] }
  0x75   : > { %1449 = vmatprep.subr.bf16.mxu0 %v1772_v8  ;;  %1637 = vmatprep.subr.bf16.mxu1 %v1772_v8  ;;  %v293_v52 = vld [vmem:[%s2130_s8 + $0x248] sm:$0xff]  ;;  %v299_v53 = vld [vmem:[%s2130_s8 + $0x278] sm:$0xff]  ;;  %v1790_v54 = vld [vmem:[#allocation4 + $0x90] sm:$0xff]   ;;  %v329_v60 = vpack.c.bf16 %v251_v51, %v245_v48 }
  0x76   : > { %v1791_v55 = vld [vmem:[#allocation4 + $0x110] sm:$0xff]   ;;  %v1792_v56 = vld [vmem:[#allocation4 + $0xd8] sm:$0xff]   ;;  %v353_v61 = vpack.c.bf16 %v299_v53, %v293_v52  ;;  %v244_v62 = vld [vmem:[%s2130_s8 + $0xc0] sm:$0xff] }
  0x77   : > { %v1793_v57 = vld [vmem:[#allocation4 + $0x158] sm:$0xff]   ;;  %v250_v63 = vld [vmem:[%s2130_s8 + $0xf0] sm:$0xff]  ;;  %v292_v0 = vld [vmem:[%s2130_s8 + $0x240] sm:$0xff] }
  0x78   : > { %1450 = vmatpush3.bf16.msra.mxu0 %v1773_v9  ;;  %1645 = vmatpush3.bf16.msra.mxu1 %v1773_v9  ;;  %v1794_v58 = vld [vmem:[#allocation4 + $0x98] sm:$0xff]   ;;  %v298_v1 = vld [vmem:[%s2130_s8 + $0x270] sm:$0xff]  ;;  %v1796_v2 = vld [vmem:[#allocation4 + $0xe0] sm:$0xff]   ;;  %v328_v6 = vpack.c.bf16 %v250_v63, %v244_v62 }
  0x79   : > { %1451 = vmatprep.subr.bf16.mxu0 %v1774_v10  ;;  %1638 = vmatprep.subr.bf16.mxu1 %v1774_v10  ;;  %v1795_v59 = vld [vmem:[#allocation4 + $0x118] sm:$0xff]   ;;  %v1797_v3 = vld [vmem:[#allocation4 + $0x160] sm:$0xff]   ;;  %v352_v7 = vpack.c.bf16 %v298_v1, %v292_v0  ;;  %v1800_v8 = vld [vmem:[#allocation4 + $0xe8] sm:$0xff]  }
  0x7a   : > { %v1798_v4 = vld [vmem:[#allocation4 + $0xa0] sm:$0xff]   ;;  %v1801_v9 = vld [vmem:[#allocation4 + $0x168] sm:$0xff]   ;;  %v263_v11 = vld [vmem:[%s2130_s8 + $0x158] sm:$0xff] }
  0x7b   : > { %v1799_v5 = vld [vmem:[#allocation4 + $0x120] sm:$0xff]   ;;  %v257_v10 = vld [vmem:[%s2130_s8 + $0x128] sm:$0xff]  ;;  %v311_v16 = vld [vmem:[%s2130_s8 + $0x2d8] sm:$0xff] }
  0x7c   : > { %1452 = vmatpush3.bf16.msra.mxu0 %v1775_v17  ;;  %1646 = vmatpush3.bf16.msra.mxu1 %v1775_v17  ;;  %v305_v12 = vld [vmem:[%s2130_s8 + $0x2a8] sm:$0xff]  ;;  %v335_v15 = vpack.c.bf16 %v263_v11, %v257_v10  ;;  %v256_v17 = vld [vmem:[%s2130_s8 + $0x120] sm:$0xff]  ;;  %v1804_v22 = vld [vmem:[#allocation4 + $0xf0] sm:$0xff]  }
  0x7d   : > { %1453 = vmatprep.subr.bf16.mxu0 %v1776_v18  ;;  %1639 = vmatprep.subr.bf16.mxu1 %v1776_v18  ;;  %v1802_v13 = vld [vmem:[#allocation4 + $0xa8] sm:$0xff]   ;;  %v262_v18 = vld [vmem:[%s2130_s8 + $0x150] sm:$0xff]  ;;  %v1808_v28 = vld [vmem:[#allocation4 + $0xf8] sm:$0xff]  }
  0x7e   : > { %v1803_v14 = vld [vmem:[#allocation4 + $0x128] sm:$0xff]   ;;  %v1805_v23 = vld [vmem:[#allocation4 + $0x170] sm:$0xff]   ;;  %v334_v25 = vpack.c.bf16 %v262_v18, %v256_v17  ;;  %v1809_v29 = vld [vmem:[#allocation4 + $0x178] sm:$0xff]  }
  0x7f   : > { %v1806_v24 = vld [vmem:[#allocation4 + $0xb0] sm:$0xff]   ;;  %v223_v32 = vld [vmem:[%s2130_s8 + $0x18] sm:$0xff]  ;;  %v241_v43 = vld [vmem:[%s2130_s8 + $0xa8] sm:$0xff] }
  0x80   : > { %1454 = vmatpush3.bf16.msra.mxu0 %v1777_v19  ;;  %1647 = vmatpush3.bf16.msra.mxu1 %v1777_v19  ;;  %v359_v19 = vpack.c.bf16 %v311_v16, %v305_v12  ;;  %v231_v35 = vld [vmem:[%s2130_s8 + $0x58] sm:$0xff]  ;;  %v240_v51 = vld [vmem:[%s2130_s8 + $0xa0] sm:$0xff]  ;;  %v242_v53 = vld [vmem:[%s2130_s8 + $0xb0] sm:$0xff] }
  0x81   : > { %1455 = vmatprep.subr.bf16.mxu0 %v1778_v20  ;;  %1640 = vmatprep.subr.bf16.mxu1 %v1778_v20  ;;  %v304_v20 = vld [vmem:[%s2130_s8 + $0x2a0] sm:$0xff]  ;;  %v235_v42 = vld [vmem:[%s2130_s8 + $0x78] sm:$0xff]  ;;  %v246_v62 = vld [vmem:[%s2130_s8 + $0xd0] sm:$0xff] }
  0x82   : > { %v325_v48 = vpack.c.bf16 %v241_v43, %v235_v42  ;;  %v236_v52 = vld [vmem:[%s2130_s8 + $0x80] sm:$0xff]  ;;  %v254_v1 = vld [vmem:[%s2130_s8 + $0x110] sm:$0xff]  ;;  %v273_v16 = vld [vmem:[%s2130_s8 + $0x1a8] sm:$0xff] }
  0x83   : > { %v252_v63 = vld [vmem:[%s2130_s8 + $0x100] sm:$0xff]  ;;  %v258_v10 = vld [vmem:[%s2130_s8 + $0x130] sm:$0xff]  ;;  %v279_v17 = vld [vmem:[%s2130_s8 + $0x1d8] sm:$0xff] }
  0x84   : > { %1456 = vmatpush3.bf16.msra.mxu0 %v1779_v21  ;;  %1648 = vmatpush3.bf16.msra.mxu1 %v1779_v21  ;;  %v310_v21 = vld [vmem:[%s2130_s8 + $0x2d0] sm:$0xff]  ;;  %v248_v0 = vld [vmem:[%s2130_s8 + $0xe0] sm:$0xff] }
  0x85   : > { %1505 = vmatprep.subr.bf16.mxu1 %v1780_v26  ;;  %1569 = vmatprep.subr.bf16.mxu0 %v1781_v27  ;;  %v358_v26 = vpack.c.bf16 %v310_v21, %v304_v20  ;;  %v1807_v27 = vld [vmem:[#allocation4 + $0x130] sm:$0xff]   ;;  %v264_v11 = vld [vmem:[%s2130_s8 + $0x160] sm:$0xff]  ;;  %v345_v21 = vpack.c.bf16 %v279_v17, %v273_v16 }
  0x86   : > { %v260_v12 = vld [vmem:[%s2130_s8 + $0x140] sm:$0xff]  ;;  %v336_v18 = vpack.c.bf16 %v264_v11, %v258_v10 }
  0x87   : > { %788 = vmatmul.mubr.bf16.vlgmr.msra.gmra.mrb[0].mxu0 %v316_v33  ;;  %820 = vmatmul.mubr.bf16.vlgmr.msra.gmra.mrb[0].mxu1 %v340_v34  ;;  %v229_v33 = vld [vmem:[%s2130_s8 + $0x48] sm:$0xff] }
  0x88   : > { %1506 = vmatpush3.bf16.msra.mxu1 %v1782_v30  ;;  %1570 = vmatpush3.bf16.msra.mxu0 %v1783_v31  ;;  %v1810_v30 = vld [vmem:[#allocation4 + $0xb8] sm:$0xff]   ;;  %v225_v34 = vld [vmem:[%s2130_s8 + $0x28] sm:$0xff] }
  0x89   : > { %1507 = vmatprep.subr.bf16.mxu1 %v1784_v36  ;;  %1571 = vmatprep.subr.bf16.mxu0 %v1785_v37  ;;  %v1811_v31 = vld [vmem:[#allocation4 + $0x138] sm:$0xff]   ;;  %v319_v36 = vpack.c.bf16 %v229_v33, %v223_v32  ;;  %v321_v37 = vpack.c.bf16 %v231_v35, %v225_v34  ;;  %v282_v34 = vld [vmem:[%s2130_s8 + $0x1f0] sm:$0xff]  ;;  %v288_v35 = vld [vmem:[%s2130_s8 + $0x220] sm:$0xff] }
  0x8a   : > { %795 = vmatprep.mubr.bf16.mxu0 %v323_v40  ;;  %827 = vmatprep.mubr.bf16.mxu1 %v347_v41  ;;  %v224_v40 = vld [vmem:[%s2130_s8 + $0x20] sm:$0xff]  ;;  %v230_v41 = vld [vmem:[%s2130_s8 + $0x50] sm:$0xff]  ;;  %v348_v42 = vpack.c.bf16 %v288_v35, %v282_v34 }
  0x8b   : > { %v320_v45 = vpack.c.bf16 %v230_v41, %v224_v40  ;;  %v297_v40 = vld [vmem:[%s2130_s8 + $0x268] sm:$0xff]  ;;  %v303_v41 = vld [vmem:[%s2130_s8 + $0x298] sm:$0xff] }
  0x8c   : > { %1508 = vmatpush3.bf16.msra.mxu1 %v1786_v38  ;;  %1572 = vmatpush3.bf16.msra.mxu0 %v1787_v39  ;;  %v222_v38 = vld [vmem:[%s2130_s8 + $0x10] sm:$0xff]  ;;  %v228_v39 = vld [vmem:[%s2130_s8 + $0x40] sm:$0xff] }
  0x8d   : > { %1509 = vmatprep.subr.bf16.mxu1 %v1788_v46  ;;  %1573 = vmatprep.subr.bf16.mxu0 %v1789_v47  ;;  %v318_v44 = vpack.c.bf16 %v228_v39, %v222_v38  ;;  %v237_v46 = vld [vmem:[%s2130_s8 + $0x88] sm:$0xff]  ;;  %v243_v47 = vld [vmem:[%s2130_s8 + $0xb8] sm:$0xff] }
  0x8e   : > { %v295_v38 = vld [vmem:[%s2130_s8 + $0x258] sm:$0xff]  ;;  %v301_v39 = vld [vmem:[%s2130_s8 + $0x288] sm:$0xff] }
  0x8f   : > { %796 = vmatmul.mubr.bf16.gmra.mrb[4].mxu0 %v322_v49  ;;  %828 = vmatmul.mubr.bf16.gmra.mrb[4].mxu1 %v346_v50  ;;  %v327_v49 = vpack.c.bf16 %v243_v47, %v237_v46  ;;  %v234_v50 = vld [vmem:[%s2130_s8 + $0x70] sm:$0xff]  ;;  %v300_v47 = vld [vmem:[%s2130_s8 + $0x280] sm:$0xff] }
  0x90   : > { %1510 = vmatpush3.bf16.msra.mxu1 %v1790_v54  ;;  %1574 = vmatpush3.bf16.msra.mxu0 %v1791_v55  ;;  %v247_v54 = vld [vmem:[%s2130_s8 + $0xd8] sm:$0xff]  ;;  %v253_v55 = vld [vmem:[%s2130_s8 + $0x108] sm:$0xff]  ;;  %v294_v46 = vld [vmem:[%s2130_s8 + $0x250] sm:$0xff] }
  0x91   : > { %1511 = vmatprep.subr.bf16.mxu1 %v1792_v56  ;;  %1575 = vmatprep.subr.bf16.mxu0 %v1793_v57  ;;  %v249_v56 = vld [vmem:[%s2130_s8 + $0xe8] sm:$0xff]  ;;  %v255_v57 = vld [vmem:[%s2130_s8 + $0x118] sm:$0xff] }
  0x92   : > { %803 = vmatprep.mubr.bf16.mxu0 %v329_v60  ;;  %835 = vmatprep.mubr.bf16.mxu1 %v353_v61  ;;  %v331_v60 = vpack.c.bf16 %v253_v55, %v247_v54  ;;  %v333_v61 = vpack.c.bf16 %v255_v57, %v249_v56  ;;  %v354_v54 = vpack.c.bf16 %v300_v47, %v294_v46 }
  0x94   : > { %1512 = vmatpush3.bf16.msra.mxu1 %v1794_v58  ;;  %1576 = vmatpush3.bf16.msra.mxu0 %v1795_v59  ;;  %v324_v58 = vpack.c.bf16 %v240_v51, %v234_v50  ;;  %v326_v59 = vpack.c.bf16 %v242_v53, %v236_v52  ;;  %v307_v50 = vld [vmem:[%s2130_s8 + $0x2b8] sm:$0xff]  ;;  %v313_v51 = vld [vmem:[%s2130_s8 + $0x2e8] sm:$0xff] }
  0x95   : > { %1513 = vmatprep.subr.bf16.mxu1 %v1796_v2  ;;  %1577 = vmatprep.subr.bf16.mxu0 %v1797_v3  ;;  %v259_v2 = vld [vmem:[%s2130_s8 + $0x138] sm:$0xff]  ;;  %v265_v3 = vld [vmem:[%s2130_s8 + $0x168] sm:$0xff]  ;;  %v361_v56 = vpack.c.bf16 %v313_v51, %v307_v50 }
  0x96   : > { %v309_v52 = vld [vmem:[%s2130_s8 + $0x2c8] sm:$0xff]  ;;  %v315_v53 = vld [vmem:[%s2130_s8 + $0x2f8] sm:$0xff] }
  0x97   : > { %804 = vmatmul.mubr.bf16.gmra.mrb[8].mxu0 %v328_v6  ;;  %836 = vmatmul.mubr.bf16.gmra.mrb[8].mxu1 %v352_v7  ;;  %v330_v6 = vpack.c.bf16 %v252_v63, %v246_v62  ;;  %v332_v7 = vpack.c.bf16 %v254_v1, %v248_v0  ;;  %v363_v57 = vpack.c.bf16 %v315_v53, %v309_v52 }
  0x98   : > { %1514 = vmatpush3.bf16.msra.mxu1 %v1798_v4  ;;  %1578 = vmatpush3.bf16.msra.mxu0 %v1799_v5  ;;  %v261_v4 = vld [vmem:[%s2130_s8 + $0x148] sm:$0xff]  ;;  %v267_v5 = vld [vmem:[%s2130_s8 + $0x178] sm:$0xff] }
  0x99   : > { %1515 = vmatprep.subr.bf16.mxu1 %v1800_v8  ;;  %1579 = vmatprep.subr.bf16.mxu0 %v1801_v9  ;;  %v337_v8 = vpack.c.bf16 %v265_v3, %v259_v2  ;;  %v339_v9 = vpack.c.bf16 %v267_v5, %v261_v4 }
  0x9a   : > { %811 = vmatprep.mubr.bf16.mxu0 %v335_v15  ;;  %843 = vmatprep.mubr.bf16.mxu1 %v359_v19  ;;  %v277_v15 = vld [vmem:[%s2130_s8 + $0x1c8] sm:$0xff] }
  0x9c   : > { %1516 = vmatpush3.bf16.msra.mxu1 %v1802_v13  ;;  %1580 = vmatpush3.bf16.msra.mxu0 %v1803_v14  ;;  %v266_v13 = vld [vmem:[%s2130_s8 + $0x170] sm:$0xff]  ;;  %v271_v14 = vld [vmem:[%s2130_s8 + $0x198] sm:$0xff] }
  0x9d   : > { %1517 = vmatprep.subr.bf16.mxu1 %v1804_v22  ;;  %1581 = vmatprep.subr.bf16.mxu0 %v1805_v23  ;;  %v338_v19 = vpack.c.bf16 %v266_v13, %v260_v12  ;;  %v343_v20 = vpack.c.bf16 %v277_v15, %v271_v14  ;;  %v270_v22 = vld [vmem:[%s2130_s8 + $0x190] sm:$0xff]  ;;  %v276_v23 = vld [vmem:[%s2130_s8 + $0x1c0] sm:$0xff] }
  0x9f   : > { %812 = vmatmul.mubr.bf16.gmra.mrb[12].mxu0 %v334_v25  ;;  %844 = vmatmul.mubr.bf16.gmra.mrb[12].mxu1 %v358_v26  ;;  %v278_v25 = vld [vmem:[%s2130_s8 + $0x1d0] sm:$0xff]  ;;  %v283_v26 = vld [vmem:[%s2130_s8 + $0x1f8] sm:$0xff] }
  0xa0   : > { %1518 = vmatpush3.bf16.msra.mxu1 %v1806_v24  ;;  %1582 = vmatpush3.bf16.msra.mxu0 %v1807_v27  ;;  %v272_v24 = vld [vmem:[%s2130_s8 + $0x1a0] sm:$0xff]  ;;  %v289_v27 = vld [vmem:[%s2130_s8 + $0x228] sm:$0xff] }
  0xa1   : > { %1519 = vmatprep.subr.bf16.mxu1 %v1808_v28  ;;  %1583 = vmatprep.subr.bf16.mxu0 %v1809_v29  ;;  %v285_v28 = vld [vmem:[%s2130_s8 + $0x208] sm:$0xff]  ;;  %v291_v29 = vld [vmem:[%s2130_s8 + $0x238] sm:$0xff]  ;;  %v349_v32 = vpack.c.bf16 %v289_v27, %v283_v26 }
  0xa2   : > { %884 = vmatprep.mubr.bf16.mxu1 %v319_v36  ;;  %981 = vmatprep.mubr.bf16.mxu0 %v321_v37  ;;  %v351_v33 = vpack.c.bf16 %v291_v29, %v285_v28  ;;  %v284_v36 = vld [vmem:[%s2130_s8 + $0x200] sm:$0xff]  ;;  %v290_v37 = vld [vmem:[%s2130_s8 + $0x230] sm:$0xff] }
  0xa3   : > { %v350_v43 = vpack.c.bf16 %v290_v37, %v284_v36 }
  0xa4   : > { %1520 = vmatpush3.bf16.msra.mxu1 %v1810_v30  ;;  %1584 = vmatpush3.bf16.msra.mxu0 %v1811_v31  ;;  %v342_v30 = vpack.c.bf16 %v276_v23, %v270_v22  ;;  %v344_v31 = vpack.c.bf16 %v278_v25, %v272_v24 }
  0xa7   : > { %885 = vmatmul.mubr.bf16.vlgmr.msra.gmra.mrb[16].mxu1 %v318_v44  ;;  %982 = vmatmul.mubr.bf16.vlgmr.msra.gmra.mrb[16].mxu0 %v320_v45  ;;  %v355_v44 = vpack.c.bf16 %v301_v39, %v295_v38  ;;  %v357_v45 = vpack.c.bf16 %v303_v41, %v297_v40 }
  0xa8   : > { %892 = vmatprep.mubr.bf16.mxu1 %v325_v48  ;;  %989 = vmatprep.mubr.bf16.mxu0 %v327_v49  ;;  %v296_v48 = vld [vmem:[%s2130_s8 + $0x260] sm:$0xff]  ;;  %v302_v49 = vld [vmem:[%s2130_s8 + $0x290] sm:$0xff] }
  0xa9   : > { %v356_v55 = vpack.c.bf16 %v302_v49, %v296_v48  ;;  %v2263_v48 = vld [vmem:[%s2417_s2] ss:$0 sm:$0xff] }
  0xaf   : > { %893 = vmatmul.mubr.bf16.gmra.mrb[20].mxu1 %v324_v58  ;;  %990 = vmatmul.mubr.bf16.gmra.mrb[20].mxu0 %v326_v59  ;;  %v306_v58 = vld [vmem:[%s2130_s8 + $0x2b0] sm:$0xff]  ;;  %v312_v59 = vld [vmem:[%s2130_s8 + $0x2e0] sm:$0xff] }
  0xb0   : > { %900 = vmatprep.mubr.bf16.mxu1 %v331_v60  ;;  %997 = vmatprep.mubr.bf16.mxu0 %v333_v61  ;;  %v308_v60 = vld [vmem:[%s2130_s8 + $0x2c0] sm:$0xff]  ;;  %v314_v61 = vld [vmem:[%s2130_s8 + $0x2f0] sm:$0xff]  ;;  %v360_v62 = vpack.c.bf16 %v312_v59, %v306_v58 }
  0xb1   : > { %v362_v63 = vpack.c.bf16 %v314_v61, %v308_v60 }
  0xb7   : > { %901 = vmatmul.mubr.bf16.gmra.mrb[24].mxu1 %v330_v6  ;;  %998 = vmatmul.mubr.bf16.gmra.mrb[24].mxu0 %v332_v7 }
  0xb8   : > { %908 = vmatprep.mubr.bf16.mxu1 %v337_v8  ;;  %1005 = vmatprep.mubr.bf16.mxu0 %v339_v9 }
  0xbf   : > { %909 = vmatmul.mubr.bf16.gmra.mrb[28].mxu1 %v336_v18  ;;  %1006 = vmatmul.mubr.bf16.gmra.mrb[28].mxu0 %v338_v19 }
  0xc0   : > { %916 = vmatprep.mubr.bf16.mxu1 %v343_v20  ;;  %1013 = vmatprep.mubr.bf16.mxu0 %v345_v21 }
  0xc7   : > { %917 = vmatmul.mubr.bf16.gmra.mrb[32].mxu1 %v342_v30  ;;  %1014 = vmatmul.mubr.bf16.gmra.mrb[32].mxu0 %v344_v31 }
  0xc8   : > { %924 = vmatprep.mubr.bf16.mxu1 %v349_v32  ;;  %1021 = vmatprep.mubr.bf16.mxu0 %v351_v33 }
  0xcf   : > { %925 = vmatmul.mubr.bf16.gmra.mrb[36].mxu1 %v348_v42  ;;  %1022 = vmatmul.mubr.bf16.gmra.mrb[36].mxu0 %v350_v43 }
  0xd0   : > { %932 = vmatprep.mubr.bf16.mxu1 %v355_v44  ;;  %1029 = vmatprep.mubr.bf16.mxu0 %v357_v45 }
  0xd7   : > { %933 = vmatmul.mubr.bf16.gmra.mrb[40].mxu1 %v354_v54  ;;  %1030 = vmatmul.mubr.bf16.gmra.mrb[40].mxu0 %v356_v55 }
  0xd8   : > { %940 = vmatprep.mubr.bf16.mxu1 %v361_v56  ;;  %1037 = vmatprep.mubr.bf16.mxu0 %v363_v57 }
  0xdf   : > { %941 = vmatmul.mubr.bf16.gmra.mrb[44].mxu1 %v360_v62  ;;  %1038 = vmatmul.mubr.bf16.gmra.mrb[44].mxu0 %v362_v63 }
 0x15a   : > { %v1457_v0 = vpop.f32.mrb[0].mxu0  ;;  %v1481_v1 = vpop.f32.mrb[0].mxu1 }
 0x15b   : > { %v1458_v2 = vpop.f32.mrb[1].mxu0  ;;  %v1482_v3 = vpop.f32.mrb[1].mxu1 }
 0x15c   : > { %v1459_v4 = vadd.f32 %v1458_v2, %v1457_v0  ;;  %v2236_v5 = vadd.f32 %v1482_v3, %v1481_v1  ;;  %v1460_v6 = vpop.f32.mrb[2].mxu0  ;;  %v1484_v7 = vpop.f32.mrb[2].mxu1 }
 0x15d   : > { %v1461_v8 = vpop.f32.mrb[3].mxu0  ;;  %v1485_v9 = vpop.f32.mrb[3].mxu1 }
 0x15e   : > { %v1462_v10 = vadd.f32 %v1461_v8, %v1460_v6  ;;  %v2238_v11 = vadd.f32 %v1485_v9, %v1484_v7  ;;  %v790_v53 = vadd.f32 %v1459_v4, %v2263_v48 }
 0x160   : > { %v793_v60 = vadd.f32 %v1462_v10, %v2263_v48 }
 0x162   : > { %v1463_v12 = vpop.f32.mrb[4].mxu0  ;;  %v1487_v13 = vpop.f32.mrb[4].mxu1 }
 0x163   : > { %v1464_v14 = vpop.f32.mrb[5].mxu0  ;;  %v1488_v15 = vpop.f32.mrb[5].mxu1 }
 0x164   : > { %v1465_v16 = vadd.f32 %v1464_v14, %v1463_v12  ;;  %v2240_v17 = vadd.f32 %v1488_v15, %v1487_v13  ;;  %v1466_v18 = vpop.f32.mrb[6].mxu0  ;;  %v1490_v19 = vpop.f32.mrb[6].mxu1 }
 0x165   : > { %v1467_v20 = vpop.f32.mrb[7].mxu0  ;;  %v1491_v21 = vpop.f32.mrb[7].mxu1 }
 0x166   : > { %v1468_v22 = vadd.f32 %v1467_v20, %v1466_v18  ;;  %v2242_v23 = vadd.f32 %v1491_v21, %v1490_v19  ;;  %v798_v8 = vadd.f32 %v1465_v16, %v2263_v48 }
 0x168   : > { %v801_v18 = vadd.f32 %v1468_v22, %v2263_v48 }
 0x16a   : > { %v1469_v24 = vpop.f32.mrb[8].mxu0  ;;  %v1493_v25 = vpop.f32.mrb[8].mxu1 }
 0x16b   : > { %v1470_v26 = vpop.f32.mrb[9].mxu0  ;;  %v1494_v27 = vpop.f32.mrb[9].mxu1 }
 0x16c   : > { %v2244_v28 = vadd.f32 %v1470_v26, %v1469_v24  ;;  %v2246_v29 = vadd.f32 %v1494_v27, %v1493_v25  ;;  %v1472_v30 = vpop.f32.mrb[10].mxu0  ;;  %v1496_v31 = vpop.f32.mrb[10].mxu1 }
 0x16d   : > { %v1473_v32 = vpop.f32.mrb[11].mxu0  ;;  %v1497_v33 = vpop.f32.mrb[11].mxu1 }
 0x16e   : > { %v2248_v34 = vadd.f32 %v1473_v32, %v1472_v30  ;;  %v2250_v35 = vadd.f32 %v1497_v33, %v1496_v31  ;;  %v806_v32 = vadd.f32 %v2244_v28, %v2263_v48 }
 0x172   : > { %v1475_v36 = vpop.f32.mrb[12].mxu0  ;;  %v1499_v37 = vpop.f32.mrb[12].mxu1 }
 0x173   : > { %v1476_v38 = vpop.f32.mrb[13].mxu0  ;;  %v1500_v39 = vpop.f32.mrb[13].mxu1 }
 0x174   : > { %v2252_v40 = vadd.f32 %v1476_v38, %v1475_v36  ;;  %v2254_v41 = vadd.f32 %v1500_v39, %v1499_v37  ;;  %v1478_v42 = vpop.f32.mrb[14].mxu0  ;;  %v1502_v43 = vpop.f32.mrb[14].mxu1 }
 0x175   : > { %v1479_v44 = vpop.f32.mrb[15].mxu0  ;;  %v1503_v45 = vpop.f32.mrb[15].mxu1 }
 0x176   : > { %v2256_v46 = vadd.f32 %v1479_v44, %v1478_v42  ;;  %v2258_v47 = vadd.f32 %v1503_v45, %v1502_v43  ;;  %v809_v42 = vadd.f32 %v2248_v34, %v2263_v48 }
 0x17a   : > { %v1521_v49 = vpop.f32.mrb[16].mxu1  ;;  %v1585_v50 = vpop.f32.mrb[16].mxu0 }
 0x17b   : > { %v1522_v51 = vpop.f32.mrb[17].mxu1  ;;  %v1586_v52 = vpop.f32.mrb[17].mxu0 }
 0x17c   : > { %v1523_v54 = vadd.f32 %v1522_v51, %v1521_v49  ;;  %v1587_v55 = vadd.f32 %v1586_v52, %v1585_v50  ;;  %v1524_v56 = vpop.f32.mrb[18].mxu1  ;;  %v1588_v57 = vpop.f32.mrb[18].mxu0 }
 0x17d   : > { %v1525_v58 = vpop.f32.mrb[19].mxu1  ;;  %v1589_v59 = vpop.f32.mrb[19].mxu0 }
 0x17e   : > { %v887_v61 = vadd.f32 %v1523_v54, %v790_v53  ;;  %v1526_v62 = vadd.f32 %v1525_v58, %v1524_v56  ;;  %v1590_v63 = vadd.f32 %v1589_v59, %v1588_v57 }
 0x180   : > { %v984_v0 = vadd.f32 %v1587_v55, %v887_v61  ;;  %v890_v1 = vadd.f32 %v1526_v62, %v793_v60  ;;  %v814_v55 = vadd.f32 %v2252_v40, %v2263_v48  ;;  %v817_v61 = vadd.f32 %v2256_v46, %v2263_v48 }
 0x182   : > { %1046 = vst [vmem:[%s2268_s30] sm:$0xff] %v984_v0  ;;  %v987_v2 = vadd.f32 %v1590_v63, %v890_v1  ;;  %v1527_v3 = vpop.f32.mrb[20].mxu1  ;;  %v1591_v4 = vpop.f32.mrb[20].mxu0 }
 0x183   : > { %v1528_v6 = vpop.f32.mrb[21].mxu1  ;;  %v1592_v7 = vpop.f32.mrb[21].mxu0 }
 0x184   : > { %1047 = vst [vmem:[%s2268_s30 + $0x8] sm:$0xff] %v987_v2  ;;  %v1529_v9 = vadd.f32 %v1528_v6, %v1527_v3  ;;  %v1593_v10 = vadd.f32 %v1592_v7, %v1591_v4  ;;  %v1530_v12 = vpop.f32.mrb[22].mxu1  ;;  %v1594_v13 = vpop.f32.mrb[22].mxu0 }
 0x185   : > { %v1531_v14 = vpop.f32.mrb[23].mxu1  ;;  %v1595_v15 = vpop.f32.mrb[23].mxu0 }
 0x186   : > { %v895_v19 = vadd.f32 %v1529_v9, %v798_v8  ;;  %v1532_v20 = vadd.f32 %v1531_v14, %v1530_v12  ;;  %v1596_v21 = vadd.f32 %v1595_v15, %v1594_v13  ;;  %v822_v8 = vadd.f32 %v2236_v5, %v2263_v48 }
 0x187   : > { %v825_v15 = vadd.f32 %v2238_v11, %v2263_v48 }
 0x188   : > { %v992_v24 = vadd.f32 %v1593_v10, %v895_v19  ;;  %v898_v25 = vadd.f32 %v1532_v20, %v801_v18 }
 0x18a   : > { %1048 = vst [vmem:[%s2268_s30 + $0x10] sm:$0xff] %v992_v24  ;;  %v995_v26 = vadd.f32 %v1596_v21, %v898_v25  ;;  %v1533_v27 = vpop.f32.mrb[24].mxu1  ;;  %v1597_v30 = vpop.f32.mrb[24].mxu0 }
 0x18b   : > { %v1534_v16 = vpop.f32.mrb[25].mxu1  ;;  %v1598_v31 = vpop.f32.mrb[25].mxu0 }
 0x18c   : > { %1049 = vst [vmem:[%s2268_s30 + $0x18] sm:$0xff] %v995_v26  ;;  %v1535_v33 = vadd.f32 %v1534_v16, %v1533_v27  ;;  %v1599_v36 = vadd.f32 %v1598_v31, %v1597_v30  ;;  %v1536_v37 = vpop.f32.mrb[26].mxu1  ;;  %v1600_v22 = vpop.f32.mrb[26].mxu0  ;;  %v830_v16 = vadd.f32 %v2240_v17, %v2263_v48 }
 0x18d   : > { %v1537_v38 = vpop.f32.mrb[27].mxu1  ;;  %v1601_v39 = vpop.f32.mrb[27].mxu0 }
 0x18e   : > { %v903_v43 = vadd.f32 %v1535_v33, %v806_v32  ;;  %v1538_v44 = vadd.f32 %v1537_v38, %v1536_v37  ;;  %v1602_v45 = vadd.f32 %v1601_v39, %v1600_v22  ;;  %v833_v22 = vadd.f32 %v2242_v23, %v2263_v48 }
 0x190   : > { %v1000_v49 = vadd.f32 %v1599_v36, %v903_v43  ;;  %v906_v50 = vadd.f32 %v1538_v44, %v809_v42 }
 0x192   : > { %1050 = vst [vmem:[%s2268_s30 + $0x20] sm:$0xff] %v1000_v49  ;;  %v1003_v51 = vadd.f32 %v1602_v45, %v906_v50  ;;  %v1539_v52 = vpop.f32.mrb[28].mxu1  ;;  %v1603_v28 = vpop.f32.mrb[28].mxu0 }
 0x193   : > { %v1540_v53 = vpop.f32.mrb[29].mxu1  ;;  %v1604_v54 = vpop.f32.mrb[29].mxu0 }
 0x194   : > { %1051 = vst [vmem:[%s2268_s30 + $0x28] sm:$0xff] %v1003_v51  ;;  %v1541_v56 = vadd.f32 %v1540_v53, %v1539_v52  ;;  %v1605_v57 = vadd.f32 %v1604_v54, %v1603_v28  ;;  %v1542_v58 = vpop.f32.mrb[30].mxu1  ;;  %v1606_v34 = vpop.f32.mrb[30].mxu0  ;;  %v838_v52 = vadd.f32 %v2246_v29, %v2263_v48 }
 0x195   : > { %v1543_v59 = vpop.f32.mrb[31].mxu1  ;;  %v1607_v60 = vpop.f32.mrb[31].mxu0 }
 0x196   : > { %v911_v62 = vadd.f32 %v1541_v56, %v814_v55  ;;  %v1544_v63 = vadd.f32 %v1543_v59, %v1542_v58  ;;  %v1608_v0 = vadd.f32 %v1607_v60, %v1606_v34 }
 0x198   : > { %v1008_v1 = vadd.f32 %v1605_v57, %v911_v62  ;;  %v914_v2 = vadd.f32 %v1544_v63, %v817_v61  ;;  %v841_v57 = vadd.f32 %v2250_v35, %v2263_v48 }
 0x19a   : > { %1052 = vst [vmem:[%s2268_s30 + $0x30] sm:$0xff] %v1008_v1  ;;  %v1011_v3 = vadd.f32 %v1608_v0, %v914_v2  ;;  %v1545_v4 = vpop.f32.mrb[32].mxu1  ;;  %v1609_v40 = vpop.f32.mrb[32].mxu0  ;;  %v846_v2 = vadd.f32 %v2254_v41, %v2263_v48 }
 0x19b   : > { %v1546_v6 = vpop.f32.mrb[33].mxu1  ;;  %v1610_v7 = vpop.f32.mrb[33].mxu0 }
 0x19c   : > { %1053 = vst [vmem:[%s2268_s30 + $0x38] sm:$0xff] %v1011_v3  ;;  %v1547_v9 = vadd.f32 %v1546_v6, %v1545_v4  ;;  %v1611_v10 = vadd.f32 %v1610_v7, %v1609_v40  ;;  %v1548_v12 = vpop.f32.mrb[34].mxu1  ;;  %v1612_v46 = vpop.f32.mrb[34].mxu0 }
 0x19d   : > { %v1549_v13 = vpop.f32.mrb[35].mxu1  ;;  %v1613_v14 = vpop.f32.mrb[35].mxu0 }
 0x19e   : > { %v919_v18 = vadd.f32 %v1547_v9, %v822_v8  ;;  %v1550_v19 = vadd.f32 %v1549_v13, %v1548_v12  ;;  %v1614_v20 = vadd.f32 %v1613_v14, %v1612_v46  ;;  %v849_v8 = vadd.f32 %v2258_v47, %v2263_v48 }
 0x1a0   : > { %v1016_v21 = vadd.f32 %v1611_v10, %v919_v18  ;;  %v922_v24 = vadd.f32 %v1550_v19, %v825_v15 }
 0x1a2   : > { %1054 = vst [vmem:[%s2268_s30 + $0x40] sm:$0xff] %v1016_v21  ;;  %v1019_v25 = vadd.f32 %v1614_v20, %v922_v24  ;;  %v1551_v26 = vpop.f32.mrb[36].mxu1  ;;  %v1615_v5 = vpop.f32.mrb[36].mxu0 }
 0x1a3   : > { %v1552_v27 = vpop.f32.mrb[37].mxu1  ;;  %v1616_v30 = vpop.f32.mrb[37].mxu0 }
 0x1a4   : > { %1055 = vst [vmem:[%s2268_s30 + $0x48] sm:$0xff] %v1019_v25  ;;  %v1553_v31 = vadd.f32 %v1552_v27, %v1551_v26  ;;  %v1617_v32 = vadd.f32 %v1616_v30, %v1615_v5  ;;  %v1554_v33 = vpop.f32.mrb[38].mxu1  ;;  %v1618_v11 = vpop.f32.mrb[38].mxu0 }
 0x1a5   : > { %v1555_v36 = vpop.f32.mrb[39].mxu1  ;;  %v1619_v37 = vpop.f32.mrb[39].mxu0 }
 0x1a6   : > { %v927_v38 = vadd.f32 %v1553_v31, %v830_v16  ;;  %v1556_v39 = vadd.f32 %v1555_v36, %v1554_v33  ;;  %v1620_v42 = vadd.f32 %v1619_v37, %v1618_v11 }
 0x1a8   : > { %v1024_v43 = vadd.f32 %v1617_v32, %v927_v38  ;;  %v930_v44 = vadd.f32 %v1556_v39, %v833_v22 }
 0x1aa   : > { %1056 = vst [vmem:[%s2268_s30 + $0x50] sm:$0xff] %v1024_v43  ;;  %v1027_v45 = vadd.f32 %v1620_v42, %v930_v44  ;;  %v1557_v49 = vpop.f32.mrb[40].mxu1  ;;  %v1621_v17 = vpop.f32.mrb[40].mxu0 }
 0x1ab   : > { %v1558_v50 = vpop.f32.mrb[41].mxu1  ;;  %v1622_v51 = vpop.f32.mrb[41].mxu0 }
 0x1ac   : > { %1057 = vst [vmem:[%s2268_s30 + $0x58] sm:$0xff] %v1027_v45  ;;  %v1559_v28 = vadd.f32 %v1558_v50, %v1557_v49  ;;  %v1623_v53 = vadd.f32 %v1622_v51, %v1621_v17  ;;  %v1560_v54 = vpop.f32.mrb[42].mxu1  ;;  %v1624_v23 = vpop.f32.mrb[42].mxu0 }
 0x1ad   : > { %v1561_v55 = vpop.f32.mrb[43].mxu1  ;;  %v1625_v56 = vpop.f32.mrb[43].mxu0 }
 0x1ae   : > { %v935_v58 = vadd.f32 %v1559_v28, %v838_v52  ;;  %v1562_v34 = vadd.f32 %v1561_v55, %v1560_v54  ;;  %v1626_v59 = vadd.f32 %v1625_v56, %v1624_v23 }
 0x1b0   : > { %v1032_v60 = vadd.f32 %v1623_v53, %v935_v58  ;;  %v938_v61 = vadd.f32 %v1562_v34, %v841_v57 }
 0x1b2   : > { %1058 = vst [vmem:[%s2268_s30 + $0x60] sm:$0xff] %v1032_v60  ;;  %v1035_v62 = vadd.f32 %v1626_v59, %v938_v61  ;;  %v1563_v63 = vpop.f32.mrb[44].mxu1  ;;  %v1627_v29 = vpop.f32.mrb[44].mxu0 }
 0x1b3   : > { %v1564_v0 = vpop.f32.mrb[45].mxu1  ;;  %v1628_v1 = vpop.f32.mrb[45].mxu0 }
 0x1b4   : > { %1059 = vst [vmem:[%s2268_s30 + $0x68] sm:$0xff] %v1035_v62  ;;  %v1565_v3 = vadd.f32 %v1564_v0, %v1563_v63  ;;  %v1629_v4 = vadd.f32 %v1628_v1, %v1627_v29  ;;  %v1566_v35 = vpop.f32.mrb[46].mxu1  ;;  %v1630_v40 = vpop.f32.mrb[46].mxu0 }
 0x1b5   : > { %v1567_v6 = vpop.f32.mrb[47].mxu1  ;;  %v1631_v7 = vpop.f32.mrb[47].mxu0 }
 0x1b6   : > { %v943_v9 = vadd.f32 %v1565_v3, %v846_v2  ;;  %v1568_v10 = vadd.f32 %v1567_v6, %v1566_v35  ;;  %v1632_v12 = vadd.f32 %v1631_v7, %v1630_v40  ;;  %1068 = sbr.rel (!%p2432_p6) target bundleno = 494 (0x1ee), region = 44 }
 0x1b8   : > { %v1040_v46 = vadd.f32 %v1629_v4, %v943_v9  ;;  %v946_v13 = vadd.f32 %v1568_v10, %v849_v8 }
 0x1ba   : > { %1060 = vst [vmem:[%s2268_s30 + $0x70] sm:$0xff] %v1040_v46  ;;  %v1043_v14 = vadd.f32 %v1632_v12, %v946_v13 }
 0x1bc   : > { %1061 = vst [vmem:[%s2268_s30 + $0x78] sm:$0xff] %v1043_v14 }
 0x1bd   : > { %s2443_s9 = smov (!%p1071_p7, %s1070_s9), 16 }
 0x1be   : > { %s1423_s12 = sshll.u32 %s2443_s9, 7 }
 0x1bf   : > { %p1426_p9 = scmp.eq.s32.totalorder %s1423_s12, 0 }
 0x1c0   : > { %s2325_s23 = sshrl.u32 (!%p1426_p9), %s2443_s9, 4 }
 0x1c1   : > { %1079 = sbr.rel (%p1426_p9) target bundleno = 494 (0x1ee), region = 48  ;;  %p1427_p12 = scmp.le.s32.totalorder (!%p1426_p9), %s2325_s23, 0 }
 0x1c8   : > { %1302 = sbr.rel (%p1427_p12) target bundleno = 473 (0x1d9), region = 130  ;;  %s2433_s16 = smov (!%p1427_p12), %s2319_s11 }
 0x1c9   : > { %s2434_s18 = smov (!%p1427_p12), %s2268_s30  ;;  %s2334_s19 = smov (!%p1427_p12), 0  }
 0x1ca   : > { %s2336_s25 = smov (!%p1427_p12), 0  }
 0x1cf LB: >> { %v1171_v41 = vld [vmem:[%s1946_s18] sm:$0xff]  ;;  %v1173_v47 = vld [vmem:[%s1946_s18 + $0x8] sm:$0xff]  ;;  %v1175_v48 = vld [vmem:[%s1946_s18 + $0x10] sm:$0xff]  ;;  %s1203_s28 = sadd.s32 1, %s1950_s19  ;;  %s1165_s25 = sadd.s32 1, %s1954_s25   ;;  %s1954_s25 = sphi %s2336_s25, %s1165_s25   ;;  %s1950_s19 = sphi %s2334_s19, %s2435_s19   ;;  %s1946_s18 = sphi %s2434_s18, %s1208_s18   ;;  %s1942_s16 = sphi %s2433_s16, %s1209_s16  }
 0x1d0   : >> { %1172 = vst [vmem:[%s1942_s16] sm:$0xff] %v1171_v41  ;;  %1174 = vst [vmem:[%s1942_s16 + $0x8] sm:$0xff] %v1173_v47  ;;  %v1177_v15 = vld [vmem:[%s1946_s18 + $0x18] sm:$0xff]  ;;  %v1179_v18 = vld [vmem:[%s1946_s18 + $0x20] sm:$0xff]  ;;  %p1204_p0 = scmp.ge.s32.totalorder %s1203_s28, %s2325_s23  ;;  %p1164_p2 = scmp.ge.s32.totalorder %s1165_s25, %s2325_s23 }
 0x1d1   : >> { %1176 = vst [vmem:[%s1942_s16 + $0x10] sm:$0xff] %v1175_v48  ;;  %v1181_v19 = vld [vmem:[%s1946_s18 + $0x28] sm:$0xff]  ;;  %1178 = vst [vmem:[%s1942_s16 + $0x18] sm:$0xff] %v1177_v15  ;;  %v1183_v20 = vld [vmem:[%s1946_s18 + $0x30] sm:$0xff] }
 0x1d2   : >> { %1180 = vst [vmem:[%s1942_s16 + $0x20] sm:$0xff] %v1179_v18  ;;  %1182 = vst [vmem:[%s1942_s16 + $0x28] sm:$0xff] %v1181_v19  ;;  %v1185_v21 = vld [vmem:[%s1946_s18 + $0x38] sm:$0xff]  ;;  %v1187_v24 = vld [vmem:[%s1946_s18 + $0x40] sm:$0xff]  ;;  %s2445_s28 = smov (%p1204_p0, %s1203_s28), 0  ;;  %1167 = sbr.rel (!%p1164_p2) target bundleno = 463 (0x1cf), region = 136 }
 0x1d3   : >> { %1184 = vst [vmem:[%s1942_s16 + $0x30] sm:$0xff] %v1183_v20  ;;  %1186 = vst [vmem:[%s1942_s16 + $0x38] sm:$0xff] %v1185_v21  ;;  %v1189_v25 = vld [vmem:[%s1946_s18 + $0x48] sm:$0xff]  ;;  %v1191_v26 = vld [vmem:[%s1946_s18 + $0x50] sm:$0xff]  ;;  %s1428_s27 = sshll.u32 %s2445_s28, 7  ;;  %s2435_s19 = smov %s2445_s28 }
 0x1d4   : >> { %1188 = vst [vmem:[%s1942_s16 + $0x40] sm:$0xff] %v1187_v24  ;;  %v1193_v5 = vld [vmem:[%s1946_s18 + $0x58] sm:$0xff]  ;;  %1190 = vst [vmem:[%s1942_s16 + $0x48] sm:$0xff] %v1189_v25  ;;  %v1195_v27 = vld [vmem:[%s1946_s18 + $0x60] sm:$0xff] }
 0x1d5   : >> { %1192 = vst [vmem:[%s1942_s16 + $0x50] sm:$0xff] %v1191_v26  ;;  %1194 = vst [vmem:[%s1942_s16 + $0x58] sm:$0xff] %v1193_v5  ;;  %v1197_v30 = vld [vmem:[%s1946_s18 + $0x68] sm:$0xff]  ;;  %v1199_v16 = vld [vmem:[%s1946_s18 + $0x70] sm:$0xff] }
 0x1d6   : >> { %1196 = vst [vmem:[%s1942_s16 + $0x60] sm:$0xff] %v1195_v27  ;;  %1198 = vst [vmem:[%s1942_s16 + $0x68] sm:$0xff] %v1197_v30  ;;  %v1201_v31 = vld [vmem:[%s1946_s18 + $0x78] sm:$0xff]  ;;  %s1208_s18 = scalar_lea.vmem %s2268_s30, %s1428_s27 [#allocation6]  }
 0x1d7   : >> { %1200 = vst [vmem:[%s1942_s16 + $0x70] sm:$0xff] %v1199_v16  ;;  %1202 = vst [vmem:[%s1942_s16 + $0x78] sm:$0xff] %v1201_v31  ;;  %s1209_s16 = scalar_lea.vmem %s2319_s11, %s1428_s27  }
 0x1d9 PF: > { %s2394_s26 = sand.u32 15, %s2443_s9   ;;  %s1439_s21 = sshll.u32 %s2325_s23, 7 }
 0x1da   : > { %s1214_s5 = scalar_lea.vmem %s2268_s30, %s1439_s21 [#allocation6]   ;;  %s1216_s6 = scalar_lea.vmem %s2319_s11, %s1439_s21  }
 0x1db   : > { %p1433_p4 = scmp.le.s32.totalorder %s2394_s26, 0 }
 0x1dc   : > { %s1956_s8 = smov (!%p1433_p4), %s1216_s6   ;;  %s1960_s22 = smov (!%p1433_p4), %s1214_s5  }
 0x1dd   : > { %1316 = sbr.rel (%p1433_p4) target bundleno = 494 (0x1ee), region = 141  ;;  %s1964_s24 = smov (!%p1433_p4), 0  }
 0x1de   : > { %s1968_s29 = smov (!%p1433_p4), 0  }
 0x1e4 LB: >> { %v1226_v32 = vld [vmem:[%s1962_s22] sm:$0xff]  ;;  %s1228_s4 = sadd.s32 1, %s1966_s24  ;;  %s1220_s29 = sadd.s32 1, %s1970_s29   ;;  %s1970_s29 = sphi %s1968_s29, %s1220_s29   ;;  %s1966_s24 = sphi %s1964_s24, %s1965_s24   ;;  %s1962_s22 = sphi %s1960_s22, %s1233_s22   ;;  %s1958_s8 = sphi %s1956_s8, %s1234_s8  }
 0x1e5   : >> { %1227 = vst [vmem:[%s1958_s8] sm:$0xff] %v1226_v32  ;;  %p1229_p8 = scmp.ge.s32.totalorder %s1228_s4, %s2394_s26  ;;  %p1219_p10 = scmp.ge.s32.totalorder %s1220_s29, %s2394_s26 }
 0x1e7   : >> { %s2447_s4 = smov (%p1229_p8, %s1228_s4), 0  ;;  %1222 = sbr.rel (!%p1219_p10) target bundleno = 484 (0x1e4), region = 147 }
 0x1e8   : >> { %s1434_s30 = sshll.u32 %s2447_s4, 3  ;;  %s1965_s24 = smov %s2447_s4  }
 0x1e9   : >> { %s1233_s22 = scalar_lea.vmem %s1214_s5, %s1434_s30 [#allocation6]   ;;  %s1234_s8 = scalar_lea.vmem %s1216_s6, %s1434_s30  }
 0x1ee PF: > { %p14_p13 = scmp.ge.s32.totalorder %s2020_s17, 4   ;;  %s2436_s12 = smov %s1930_s13 }
 0x1ef   : > { %s2437_s13 = smov %s1934_s14  ;;  %s2438_s14 = smov %s2030_s20 }
 0x1f0   : > { %s2439_s15 = smov %s2020_s17  ;;  %16 = sbr.rel (!%p14_p13) target bundleno = 4 (0x4), region = 158 }
 0x1f7   :  { %1250 = vsyncpa [#allocation3], 1 }
 0x1f8   :  { %1252 = vsyncpa [#allocation3 + $0x1], 1 }
 0x1f9   :  { %1253 = vsyncpa [#allocation5], 1 }

</bundles_post_ra>
